<compile_context>
chip_gen: v5e
topology: v5e:2x2
jax: 0.10.0
libtpu: 0.0.40
codegen_flags: <defaults>
</compile_context>

<pallas_src>
import jax
import jax.numpy as jnp
import numpy as np
from jax.experimental import pallas as pl
from jax.experimental.pallas import tpu as pltpu

N_EMBD = 32                      # n_embd (kept small; real config uses 512)
N_HEAD = 4
HEAD_SIZE = N_EMBD // N_HEAD     # 8
BLOCK_SIZE = 8                   # block_size (sequence length T)


def head_kernel(x_ref, wq_ref, wk_ref, wv_ref, bias_ref, out_ref):
    """One sequence of single-head causal attention.

    x_ref   : (T, C)   activations for this batch element (batch squeezed)
    wq_ref  : (C, HS)  query weight, pre-scaled by C**-0.5
    wk_ref  : (C, HS)  key weight
    wv_ref  : (C, HS)  value weight
    bias_ref: (T, T)   additive causal bias (0 on/below diag, -1e30 above)
    out_ref : (T, HS)
    """
    x = x_ref[...]
    q = jnp.dot(x, wq_ref[...], preferred_element_type=jnp.float32)
    k = jnp.dot(x, wk_ref[...], preferred_element_type=jnp.float32)
    v = jnp.dot(x, wv_ref[...], preferred_element_type=jnp.float32)

    # (T, T) scores; the C**-0.5 scale is already folded into wq.
    wei = jnp.dot(q, k.T, preferred_element_type=jnp.float32) + bias_ref[...]

    # Manual softmax: exp on EUP, reciprocal on EUP (approx), multiply on VPU.
    m = jnp.max(wei, axis=-1, keepdims=True)
    e = jnp.exp(wei - m)
    s = jnp.sum(e, axis=-1, keepdims=True)
    p = e * pl.reciprocal(s, approx=True)

    out_ref[...] = jnp.dot(
        p, v, preferred_element_type=jnp.float32
    ).astype(out_ref.dtype)


def head_forward(x, wq_scaled, wk, wv, causal_bias):
    """x: (B, T, C); wq_scaled already contains the C**-0.5 scale."""
    B, T, C = x.shape
    HS = wq_scaled.shape[1]

    return pl.pallas_call(
        head_kernel,
        out_shape=jax.ShapeDtypeStruct((B, T, HS), x.dtype),
        grid=(B,),
        in_specs=[
            pl.BlockSpec((pl.Squeezed(), T, C), lambda b: (b, 0, 0)),
            pl.BlockSpec((C, HS), lambda b: (0, 0)),
            pl.BlockSpec((C, HS), lambda b: (0, 0)),
            pl.BlockSpec((C, HS), lambda b: (0, 0)),
            pl.BlockSpec((T, T), lambda b: (0, 0)),
        ],
        out_specs=pl.BlockSpec((pl.Squeezed(), T, HS), lambda b: (b, 0, 0)),
        compiler_params=pltpu.CompilerParams(
            dimension_semantics=("parallel",)),
    )(x, wq_scaled, wk, wv, causal_bias)


def reference_head(x, wq, wk, wv):
    """Pure-JAX mirror of the PyTorch Head.forward (dropout = identity)."""
    B, T, C = x.shape
    q = x @ wq
    k = x @ wk
    v = x @ wv
    wei = q @ jnp.swapaxes(k, -1, -2) * (C ** -0.5)
    mask = jnp.tril(jnp.ones((T, T), dtype=bool))
    wei = jnp.where(mask, wei, -jnp.inf)
    wei = jax.nn.softmax(wei, axis=-1)
    return wei @ v


if __name__ == "__main__":
    key = jax.random.PRNGKey(0)
    k_x, k_q, k_k, k_v = jax.random.split(key, 4)

    B, T, C, HS = 2, BLOCK_SIZE, N_EMBD, HEAD_SIZE
    x = jax.random.normal(k_x, (B, T, C), jnp.float32)
    s = 0.02
    wq = s * jax.random.normal(k_q, (C, HS), jnp.float32)
    wk = s * jax.random.normal(k_k, (C, HS), jnp.float32)
    wv = s * jax.random.normal(k_v, (C, HS), jnp.float32)

    # One-time fold of the attention scale into the query projection
    # (done at parameter-creation time, not per call).
    wq_scaled = wq * (C ** -0.5)

    # Precomputed additive causal bias (host-side numpy, passed as VMEM input;
    # -1e30 instead of -inf so a masked row can never produce NaN).
    causal_bias = jnp.asarray(
        np.where(np.tril(np.ones((T, T), dtype=bool)), 0.0, -1e30)
        .astype(np.float32))

    out = head_forward(x, wq_scaled, wk, wv, causal_bias)
    out = jax.block_until_ready(out)

    ref = reference_head(x, wq, wk, wv)
    # Tolerance loosened slightly to cover the approx (EUP) reciprocal in the
    # softmax normalization; everything else is f32 with f32 accumulation.
    np.testing.assert_allclose(np.asarray(out), np.asarray(ref),
                               rtol=5e-3, atol=1e-4)
    print("KERNEL_OK")
</pallas_src>

<mosaic_0001>
module attributes {stable_mosaic.version = 11 : i64} {
  func.func @head_kernel(%arg0: i32, %arg1: memref<1x8x32xf32, #tpu.memory_space<vmem>>, %arg2: memref<32x8xf32, #tpu.memory_space<vmem>>, %arg3: memref<32x8xf32, #tpu.memory_space<vmem>>, %arg4: memref<32x8xf32, #tpu.memory_space<vmem>>, %arg5: memref<8x8xf32, #tpu.memory_space<vmem>>, %arg6: memref<1x8x8xf32, #tpu.memory_space<vmem>>) attributes {dimension_semantics = [#tpu.dimension_semantics<parallel>], iteration_bounds = array<i64: 2>, scalar_prefetch = 0 : i64, scratch_operands = 0 : i64, tpu.core_type = #tpu.core_type<tc>, window_params = [{transform_indices = @transform_0, window_bounds = array<i64: 1, 8, 32>}, {pipeline_mode = #tpu.pipeline_mode<synchronous>, transform_indices = @transform_1, window_bounds = array<i64: 32, 8>}, {pipeline_mode = #tpu.pipeline_mode<synchronous>, transform_indices = @transform_2, window_bounds = array<i64: 32, 8>}, {pipeline_mode = #tpu.pipeline_mode<synchronous>, transform_indices = @transform_3, window_bounds = array<i64: 32, 8>}, {pipeline_mode = #tpu.pipeline_mode<synchronous>, transform_indices = @transform_4, window_bounds = array<i64: 8, 8>}, {transform_indices = @transform_5, window_bounds = array<i64: 1, 8, 8>}]} {
    %c0 = arith.constant 0 : index
    %c0_0 = arith.constant 0 : index
    %c0_1 = arith.constant 0 : index
    %0 = vector.load %arg1[%c0, %c0_0, %c0_1] : memref<1x8x32xf32, #tpu.memory_space<vmem>>, vector<1x8x32xf32>
    %1 = vector.shape_cast %0 : vector<1x8x32xf32> to vector<8x32xf32>
    %c0_2 = arith.constant 0 : index
    %c0_3 = arith.constant 0 : index
    %2 = vector.load %arg2[%c0_2, %c0_3] : memref<32x8xf32, #tpu.memory_space<vmem>>, vector<32x8xf32>
    %cst = arith.constant dense<0.000000e+00> : vector<8x8xf32>
    %3 = tpu.matmul %1, %2, %cst {dimension_numbers = #tpu.dot_dimension_numbers<[1], [0], [0], [1], [0, 0, 1, 1], [], []>} : vector<8x32xf32>, vector<32x8xf32>, vector<8x8xf32> -> vector<8x8xf32>
    %c0_4 = arith.constant 0 : index
    %c0_5 = arith.constant 0 : index
    %4 = vector.load %arg3[%c0_4, %c0_5] : memref<32x8xf32, #tpu.memory_space<vmem>>, vector<32x8xf32>
    %cst_6 = arith.constant dense<0.000000e+00> : vector<8x8xf32>
    %5 = tpu.matmul %1, %4, %cst_6 {dimension_numbers = #tpu.dot_dimension_numbers<[1], [0], [0], [1], [0, 0, 1, 1], [], []>} : vector<8x32xf32>, vector<32x8xf32>, vector<8x8xf32> -> vector<8x8xf32>
    %c0_7 = arith.constant 0 : index
    %c0_8 = arith.constant 0 : index
    %6 = vector.load %arg4[%c0_7, %c0_8] : memref<32x8xf32, #tpu.memory_space<vmem>>, vector<32x8xf32>
    %cst_9 = arith.constant dense<0.000000e+00> : vector<8x8xf32>
    %7 = tpu.matmul %1, %6, %cst_9 {dimension_numbers = #tpu.dot_dimension_numbers<[1], [0], [0], [1], [0, 0, 1, 1], [], []>} : vector<8x32xf32>, vector<32x8xf32>, vector<8x8xf32> -> vector<8x8xf32>
    %8 = tpu.transpose %5, [1, 0] : vector<8x8xf32> -> vector<8x8xf32>
    %cst_10 = arith.constant dense<0.000000e+00> : vector<8x8xf32>
    %9 = tpu.matmul %3, %8, %cst_10 {dimension_numbers = #tpu.dot_dimension_numbers<[1], [0], [0], [1], [0, 0, 1, 1], [], []>} : vector<8x8xf32>, vector<8x8xf32>, vector<8x8xf32> -> vector<8x8xf32>
    %c0_11 = arith.constant 0 : index
    %c0_12 = arith.constant 0 : index
    %10 = vector.load %arg5[%c0_11, %c0_12] : memref<8x8xf32, #tpu.memory_space<vmem>>, vector<8x8xf32>
    %11 = arith.addf %9, %10 : vector<8x8xf32>
    %cst_13 = arith.constant dense<0xFF800000> : vector<8xf32>
    %12 = vector.multi_reduction <maximumf>, %11, %cst_13 [1] : vector<8x8xf32> to vector<8xf32>
    %13 = vector.shape_cast %12 : vector<8xf32> to vector<8x1xf32>
    %14 = vector.broadcast %13 : vector<8x1xf32> to vector<8x8xf32>
    %15 = arith.subf %11, %14 : vector<8x8xf32>
    %16 = math.exp %15 : vector<8x8xf32>
    %cst_14 = arith.constant dense<0.000000e+00> : vector<8xf32>
    %17 = vector.multi_reduction <add>, %16, %cst_14 [1] : vector<8x8xf32> to vector<8xf32>
    %18 = vector.shape_cast %17 : vector<8xf32> to vector<8x1xf32>
    %19 = tpu.reciprocal %18 {approx = true} : vector<8x1xf32> -> vector<8x1xf32>
    %20 = vector.broadcast %19 : vector<8x1xf32> to vector<8x8xf32>
    %21 = arith.mulf %16, %20 : vector<8x8xf32>
    %cst_15 = arith.constant dense<0.000000e+00> : vector<8x8xf32>
    %22 = tpu.matmul %21, %7, %cst_15 {dimension_numbers = #tpu.dot_dimension_numbers<[1], [0], [0], [1], [0, 0, 1, 1], [], []>} : vector<8x8xf32>, vector<8x8xf32>, vector<8x8xf32> -> vector<8x8xf32>
    %c0_16 = arith.constant 0 : index
    %c0_17 = arith.constant 0 : index
    %c0_18 = arith.constant 0 : index
    %23 = vector.load %arg6[%c0_16, %c0_17, %c0_18] : memref<1x8x8xf32, #tpu.memory_space<vmem>>, vector<1x8x8xf32>
    %24 = vector.shape_cast %23 : vector<1x8x8xf32> to vector<8x8xf32>
    %25 = vector.shape_cast %22 : vector<8x8xf32> to vector<1x8x8xf32>
    tpu.vector_store %arg6[%c0_16, %c0_17, %c0_18], %25 {strides = array<i32>} : memref<1x8x8xf32, #tpu.memory_space<vmem>>, vector<1x8x8xf32>,
    return
  }
  func.func @transform_0(%arg0: i32) -> (i32, i32, i32) {
    %c0_i32 = arith.constant 0 : i32
    %c0_i32_0 = arith.constant 0 : i32
    %c0_i32_1 = arith.constant 0 : i32
    return %arg0, %c0_i32, %c0_i32_0 : i32, i32, i32
  }
  func.func @transform_1(%arg0: i32) -> (i32, i32) {
    %c0_i32 = arith.constant 0 : i32
    %c0_i32_0 = arith.constant 0 : i32
    %c0_i32_1 = arith.constant 0 : i32
    return %c0_i32, %c0_i32_0 : i32, i32
  }
  func.func @transform_2(%arg0: i32) -> (i32, i32) {
    %c0_i32 = arith.constant 0 : i32
    %c0_i32_0 = arith.constant 0 : i32
    %c0_i32_1 = arith.constant 0 : i32
    return %c0_i32, %c0_i32_0 : i32, i32
  }
  func.func @transform_3(%arg0: i32) -> (i32, i32) {
    %c0_i32 = arith.constant 0 : i32
    %c0_i32_0 = arith.constant 0 : i32
    %c0_i32_1 = arith.constant 0 : i32
    return %c0_i32, %c0_i32_0 : i32, i32
  }
  func.func @transform_4(%arg0: i32) -> (i32, i32) {
    %c0_i32 = arith.constant 0 : i32
    %c0_i32_0 = arith.constant 0 : i32
    %c0_i32_1 = arith.constant 0 : i32
    return %c0_i32, %c0_i32_0 : i32, i32
  }
  func.func @transform_5(%arg0: i32) -> (i32, i32, i32) {
    %c0_i32 = arith.constant 0 : i32
    %c0_i32_0 = arith.constant 0 : i32
    %c0_i32_1 = arith.constant 0 : i32
    return %arg0, %c0_i32, %c0_i32_0 : i32, i32, i32
  }
}

</mosaic_0001>

<bundles_post_ra>
// kernel: tpu_custom_call.1
= control target key start
LH: loop header
LB: loop body
LE: loop exit
PB: predicated region body
PF: predicated region fallthrough
CT: control target
= control target key end

     0   :  { %10 = vsyncpa [#allocation3], 0  ;;  %s721_s0 = inlined_call_operand.vmem [shape: f32[2,8,32], index: 0, kind: input, shape index: {}]   ;;  %s722_s1 = inlined_call_operand.vmem [shape: f32[32,8], index: 1, kind: input, shape index: {}]   ;;  %s723_s2 = inlined_call_operand.vmem [shape: f32[32,8], index: 2, kind: input, shape index: {}]   ;;  %s724_s3 = inlined_call_operand.vmem [shape: f32[32,8], index: 3, kind: input, shape index: {}]   ;;  %s725_s4 = inlined_call_operand.vmem [shape: f32[8,8], index: 4, kind: input, shape index: {}]   ;;  %s726_s5 = inlined_call_operand.hbm [shape: f32[2,8,8], index: 5, kind: output, shape index: {}]  }
   0x1   :  { %12 = vsyncpa [#allocation3 + $0x1], 0  ;;  %s588_s18 = smov 0   ;;  %s590_s19 = smov 0  }
   0x2   :  { %s592_s20 = smov 0   ;;  %s594_s21 = smov 0  }
   0x3 LB: > { %s609_s22 = sadd.s32 4294967295, %s556_s21   ;;  %s435_s23 = sadd.s32 4294967294, %s556_s21   ;;  %s556_s21 = sphi %s594_s21, %s732_s21   ;;  %s552_s20 = sphi %s592_s20, %s731_s20   ;;  %s548_s19 = sphi %s590_s19, %s730_s19   ;;  %s544_s18 = sphi %s588_s18, %s729_s18  }
   0x4   : > { %s613_s24 = sadd.s32 1, %s556_s21   ;;  %s135_s25 = sadd.s32 1, %s552_s20 }
   0x5   : > { %s132_s26 = ssub.s32 %s556_s21, %s613_s24  ;;  %p145_p0 = scmp.ne.s32.totalorder %s552_s20, %s548_s19 }
   0x6   : > { %p133_p1 = scmp.eq.s32.totalorder %s132_s26, 0  ;;  %p146_p2 = scmp.eq.s32.totalorder %s609_s22, 1 }
   0x7   : > { %p151_p3 = scmp.ne.s32.totalorder %s548_s19, %s544_s18  ;;  %p152_p4 = scmp.eq.s32.totalorder %s435_s23, 1 }
   0x8   : > { %s624_s27 = scalar_select %p133_p1, %s552_s20, %s135_s25  }
   0x9   : > { %p626_p5 = por %p146_p2, %p145_p0  ;;  %p630_p6 = por %p152_p4, %p151_p3 }
   0xa   : > { %p438_p7 = scmp.ge.s32.totalorder %s556_s21, 1  ;;  %p189_p8 = scmp.lt.s32.totalorder %s556_s21, 3 }
   0xc   : > { %p190_p9 = pnand %p438_p7, %p189_p8 }
   0xd   : > { %p216_p10 = scmp.lt.s32.totalorder (!%p190_p9), %s609_s22, 1  ;;  %s448_s6 = sshll.u32 (!%p190_p9), %s609_s22, 3 }
   0xe   : > { %193 = sbr.rel (%p190_p9) target bundleno = 679 (0x2a7), region = 40 }
  0x13   : > { %v252_v0 = vld [vmem:[%s723_s2 + $0x18] sm:$0xff]  ;;  %v251_v1 = vld [vmem:[%s723_s2 + $0x10] sm:$0xff]  ;;  %v250_v4 = vld [vmem:[%s723_s2 + $0x8] sm:$0xff]  ;;  %s217_s17 = scalar_select %p216_p10, %s609_s22, 1  ;;  %vm225_vm0 = vcmask 261120   ;;  %vm298_vm1 = vcmask 64512  }
  0x14   : > { %v224_v2 = vld [vmem:[%s722_s1 + $0x18] sm:$0xff]  ;;  %265 = vmatpush.msra.mxu1 %v252_v0  ;;  %v223_v3 = vld [vmem:[%s722_s1 + $0x10] sm:$0xff]  ;;  %v222_v5 = vld [vmem:[%s722_s1 + $0x8] sm:$0xff] }
  0x15   : > { %241 = vmatpush.msra.mxu0 %v224_v2  ;;  %v249_v6 = vld [vmem:[%s723_s2] sm:$0xff]  ;;  %s440_s26 = sshll.u32 %s217_s17, 3  ;;  %v276_v11 = vld [vmem:[%s724_s3 + $0x18] sm:$0xff]  ;;  %v275_v12 = vld [vmem:[%s724_s3 + $0x10] sm:$0xff]  ;;  %s514_s17 = scalar_lea.hbm %s726_s5, 16 }
  0x16   : > { %266 = vmatpush.msra.mxu1 %v251_v1  ;;  %v221_v7 = vld [vmem:[%s722_s1] sm:$0xff]  ;;  %s219_s9 = scalar_lea.vmem %s721_s0, %s440_s26  ;;  %289 = vmatpush.msra.mxu2 %v276_v11  ;;  %v274_v13 = vld [vmem:[%s724_s3 + $0x8] sm:$0xff]  ;;  %s213_s26 = sand.u32 1, %s548_s19  }
  0x17   : > { %242 = vmatpush.msra.mxu0 %v223_v3  ;;  %v220_v8 = vld [vmem:[%s219_s9] sm:$0xff]  ;;  %s439_s30 = sshll.u32 %s213_s26, 3  ;;  %s371_s9 = scalar_lea.hbm %s726_s5, %s448_s6 }
  0x18   : > { %267 = vmatpush.msra.mxu1 %v250_v4  ;;  %290 = vmatpush.msra.mxu2 %v275_v12  ;;  %v273_v14 = vld [vmem:[%s724_s3] sm:$0xff]  ;;  %s215_s10 = scalar_lea.vmem [#allocation2], %s439_s30  ;;  %s375_s12 = sshll.u32 %s371_s9, 4  ;;  %s376_s12 = int_to_ptr.hbm [resolvable:$true] %s375_s12 }
  0x19   : > { %243 = vmatpush.msra.mxu0 %v222_v5  ;;  %v297_v15 = vld [vmem:[%s725_s4] sm:$0xff]  ;;  %s373_s11 = sshll.u32 %s215_s10, 4  ;;  %s361_s13 = scalar_lea.sflag [#allocation3], %s213_s26  ;;  %s374_s11 = int_to_ptr.vmem [resolvable:$true] %s373_s11 }
  0x1a   : > { %268 = vmatpush.msra.mxu1 %v249_v6  ;;  %291 = vmatpush.msra.mxu2 %v274_v13  ;;  %s508_s14 = sshra.s32 %s376_s12, 4  ;;  %s509_s14 = int_to_ptr.hbm [resolvable:$true] %s508_s14 }
  0x1b   : > { %244 = vmatpush.msra.mxu0 %v221_v7  ;;  %442 = vmatmul.msk.f32.vlgmr.msra.gmra.mxu1 %vm225_vm0, %v220_v8  ;;  %s510_s15 = scalar_lea.hbm %s509_s14, 8  ;;  %p515_p0 = scmp.lt.s32.totalorder %s509_s14, %s726_s5 }
  0x1c   : > { %441 = vmatmul.msk.f32.vlgmr.msra.gmra.mxu0 %vm225_vm0, %v220_v8  ;;  %292 = vmatpush.msra.mxu2 %v273_v14  ;;  %p511_p11 = scmp.ne.s32.totalorder %s509_s14, %s510_s15  ;;  %p516_p1 = scmp.lt.s32.totalorder %s514_s17, %s510_s15 }
  0x1d   : > { %443 = vmatmul.msk.f32.vlgmr.msra.gmra.mxu2 %vm225_vm0, %v220_v8 }
  0x1e   : > { %p512_p12 = pnand %p511_p11, %p626_p5  ;;  %p517_p2 = por %p516_p1, %p515_p0 }
  0x20   : > { %p513_p13 = pneg %p512_p12 }
  0x22   : > { %p518_p3 = pnand %p517_p2, %p513_p13 }
  0x98   : > { %v270_v9 = vpop.f32.mrf.mxu1 }
  0x99   : > { %444 = vmatpush.xpose.msk.msra.mxu3 %vm298_vm1, %v270_v9  ;;  %v246_v10 = vpop.f32.mrf.mxu0 }
  0x9c   : > { %445 = vmatmul.msk.f32.vlgmr.msra.gmra.mxu3 %vm298_vm1, %v246_v10 }
  0xa0   : > { %v294_v24 = vpop.f32.mrf.mxu2 }
  0xa1   : > { %354 = vmatpush.msrb.mxu3 %v294_v24 }
 0x11f   : > { %v322_v16 = vpop.f32.mrf.mxu3 }
 0x120   : > { %v323_v17 = vadd.f32 %v322_v16, %v297_v15 }
 0x122   : > { %v325_v18 = vsel %vm298_vm1, %v323_v17, -inf }
 0x123   : > { %326 = vmax.xlane.f32.xlu0 %v325_v18 }
 0x196   : > { %v327_v19 = vpop.xlane.xlu0 %326 }
 0x197   : > { %v328_v20 = vsub.f32 %v323_v17, %v327_v19 }
 0x199   : > { %v329_v21 = vmul.f32 1.442695, %v328_v20 }
 0x19b   : > { %490 = vpow2.f32 %v329_v21 }
 0x1a1   : > { %v491_v22 = vpop.eup %490 }
 0x1a2   : > { %v331_v23 = vsel %vm298_vm1, %v491_v22, 0.0 }
 0x1a3   : > { %332 = vadd.xlane.f32.xlu0 %v331_v23 }
 0x216   : > { %v333_v25 = vpop.xlane.xlu0 %332 }
 0x217   : > { %492 = vrcp.f32 %v333_v25 }
 0x21d   : > { %v493_v26 = vpop.eup %492 }
 0x21e   : > { %v335_v27 = vmul.f32 %v493_v26, %v491_v22 }
 0x220   : > { %446 = vmatmul.msk.f32.vlgmr.msrb.gmra.mxu3 %vm298_vm1, %v335_v27 }
 0x2a3   : > { %v356_v28 = vpop.f32.mrf.mxu3 }
 0x2a4   : > { %359 = vst.msk [vmem:[%s215_s10] sm:$0xff] %vm298_vm1, %v356_v28 }
 0x2a5   : > { %521 = shalt.err (!%p518_p3)
}
 0x2a6   : > { %451 = dma.vmem_to_hbm [thread:$0]  (%p626_p5), %s374_s11, 128, %s376_s12, %s361_s13  }
 0x2a7 PF: > { %p457_p4 = scmp.ge.s32.totalorder %s556_s21, 2  ;;  %s387_s26 = sand.u32 1, %s544_s18  }
 0x2a8   : > { %s388_s30 = scalar_lea.sflag [#allocation3], %s387_s26 }
 0x2a9   : > { %p454_p7 = pnand %p457_p4, %p630_p6 }
 0x2ab   : > { %p455_p8 = pneg %p454_p7 }
 0x2ad   : > { %539 = dma.done.wait (%p455_p8), %s388_s30, 128  }
 0x2ae   : > { %541 = vsyncadd (%p455_p8), %s388_s30, 4294967168  ;;  %p15_p9 = scmp.ge.s32.totalorder %s613_s24, 4   ;;  %s729_s18 = smov %s548_s19 }
 0x2af   : > { %s730_s19 = smov %s552_s20  ;;  %s731_s20 = smov %s624_s27 }
 0x2b0   : > { %s732_s21 = smov %s613_s24  ;;  %17 = sbr.rel (!%p15_p9) target bundleno = 3 (0x3), region = 75 }
 0x2b5   :  { %394 = vsyncpa [#allocation3], 1 }
 0x2b6   :  { %396 = vsyncpa [#allocation3 + $0x1], 1 }

</bundles_post_ra>
